<compile_context>
chip_gen: v5e
topology: v5e:2x2
jax: 0.10.0
libtpu: 0.0.40
codegen_flags: <defaults>
</compile_context>

<pallas_src>
import functools

import jax
import jax.numpy as jnp
from jax.experimental import pallas as pl
from jax.experimental.pallas import tpu as pltpu


def mlp_kernel(x_ref, *refs, num_layers, negative_slope, use_bf16_matmul):
    """Fused MLP forward for one row-tile of the batch.

    refs layout: (w0, b0, w1, b1, ..., w_{L-1}, b_{L-1}, out_ref).
    The last weight/bias are padded to a lane-dense (>=128) class dimension
    (zero weight columns, -inf bias), so LogSoftmax over real classes is exact.
    """
    out_ref = refs[-1]
    wb_refs = refs[:-1]

    x = x_ref[...]                                    # (TB, in_dim) f32

    for l in range(num_layers):                       # static unroll (small L)
        w = wb_refs[2 * l][...]                       # (in_d, out_d) bf16/f32
        b = wb_refs[2 * l + 1][...]                   # (1, out_d)    f32
        lhs = x.astype(w.dtype) if use_bf16_matmul else x
        # bf16 (or f32) MXU inputs, f32 accumulation.
        x = jnp.dot(lhs, w, preferred_element_type=jnp.float32) + b
        if l < num_layers - 1:
            # LeakyReLU (PyTorch default negative_slope = 0.01).
            x = jnp.maximum(x, negative_slope * x)
            # Dropout: identity in eval mode.
            # TODO(synk): training-mode dropout would need pltpu.prng_* masking.

    # LogSoftmax(dim=1), numerically stable, f32.  Padded class columns carry
    # -inf logits -> exp() == 0, so they do not perturb the normalizer.
    m = jnp.max(x, axis=-1, keepdims=True)
    z = x - m
    lse = jnp.log(jnp.sum(jnp.exp(z), axis=-1, keepdims=True))
    out_ref[...] = (z - lse).astype(out_ref.dtype)    # lane-dense 128-wide store


def _round_up(n, m):
    return ((n + m - 1) // m) * m


def _pick_vmem_limit(row_tile, in_dim, c_pad, weights, biases,
                     single_buffer_weights):
    """Size the VMEM budget from the real footprint, capped below physical VMEM."""
    wb_buffers = 1 if single_buffer_weights else 2
    w_bytes = sum(int(w.size) * w.dtype.itemsize for w in weights) * wb_buffers
    b_bytes = sum(int(b.size) * b.dtype.itemsize for b in biases) * wb_buffers
    x_bytes = row_tile * in_dim * 4 * 2               # double-buffered input tile
    o_bytes = row_tile * c_pad * 4 * 2                # double-buffered output tile
    widest = max([w.shape[1] for w in weights] + [in_dim])
    act_bytes = row_tile * widest * 4 * 4             # live activations / spill slack
    need = w_bytes + b_bytes + x_bytes + o_bytes + act_bytes + (4 << 20)
    try:                                              # 128 MiB v5e/v6e, 64 MiB v7x
        phys = getattr(pltpu.get_tpu_info(), "vmem_capacity_bytes", 64 << 20)
    except Exception:
        phys = 64 << 20                               # conservative (v7x per-TC)
    return int(min(max(need, 32 << 20), int(phys * 0.85)))


def mlp_forward(x, weights, biases, *, row_tile=512, negative_slope=0.01,
                use_bf16_matmul=True):
    """Run the fused MLP kernel, tiling the batch over a parallel grid axis.

    NOTE: on v7x (2 TensorCores) pick row_tile so the grid has an even number
    of steps; on v5e/v6e (1 TC) just make the tile as large as VMEM allows.
    """
    B, F = x.shape
    num_layers = len(weights)
    num_classes = weights[-1].shape[1]

    row_tile = min(row_tile, B)
    assert B % row_tile == 0, "pad the batch host-side to a multiple of row_tile"
    assert row_tile == B or row_tile % 8 == 0, "row_tile must be sublane-aligned"
    grid = (pl.cdiv(B, row_tile),)

    # bf16 weights (host-side cast): halves weight DMA/VMEM and hits the bf16
    # MXU fast path.  Biases are negligible in size -> kept f32 for exactness.
    if use_bf16_matmul:
        weights = [w.astype(jnp.bfloat16) for w in weights]
    biases = [b.astype(jnp.float32) for b in biases]

    # Lane-dense output: pad the class dim up to a multiple of 128.
    c_pad = _round_up(max(num_classes, 128), 128)
    pad = c_pad - num_classes
    if pad:
        weights = weights[:-1] + [jnp.pad(weights[-1], ((0, 0), (0, pad)))]
        biases = biases[:-1] + [jnp.concatenate(
            [biases[-1], jnp.full((1, pad), -jnp.inf, biases[-1].dtype)], axis=1)]

    flat_wb = []
    for w, b in zip(weights, biases):
        flat_wb += [w, b]

    kernel = functools.partial(
        mlp_kernel, num_layers=num_layers, negative_slope=negative_slope,
        use_bf16_matmul=use_bf16_matmul)

    def run(single_buffer_weights):
        # Weights/biases have a constant block index -> VMEM-resident; Buffered(1)
        # drops their second pipeline buffer (VMEM guard for v7x's 64 MiB).
        wb_kwargs = (dict(pipeline_mode=pl.Buffered(1))
                     if single_buffer_weights else {})
        in_specs = [pl.BlockSpec((row_tile, F), lambda i: (i, 0))]
        for w, b in zip(weights, biases):
            in_specs.append(pl.BlockSpec(w.shape, lambda i: (0, 0), **wb_kwargs))
            in_specs.append(pl.BlockSpec(b.shape, lambda i: (0, 0), **wb_kwargs))
        out_specs = pl.BlockSpec((row_tile, c_pad), lambda i: (i, 0))
        return pl.pallas_call(
            kernel,
            out_shape=jax.ShapeDtypeStruct((B, c_pad), jnp.float32),
            grid=grid,
            in_specs=in_specs,
            out_specs=out_specs,
            compiler_params=pltpu.CompilerParams(
                dimension_semantics=("parallel",),   # shards row-tiles on v7x TCs
                vmem_limit_bytes=_pick_vmem_limit(
                    row_tile, F, c_pad, weights, biases, single_buffer_weights)),
        )(x, *flat_wb)

    try:
        out_padded = run(single_buffer_weights=True)
    except Exception:
        # Fallback for builds that reject pipeline_mode=Buffered(1): double-
        # buffered weights are still correct, just use more VMEM.
        out_padded = run(single_buffer_weights=False)

    return out_padded[:, :num_classes]


def fold_batchnorm_into_linear(w, b, gamma, beta, mean, var, eps=1e-5):
    """Fold eval-mode BatchNorm1d into the preceding Linear."""
    scale = gamma * jax.lax.rsqrt(var + eps)          # (out_d,)
    return w * scale[None, :], (b - mean) * scale + beta


def init_mlp_params(key, num_features, num_classes, num_layers, hidden_size,
                    batch_norm=True):
    """PyTorch-style init: Linear(U[-1/sqrt(in), 1/sqrt(in)]), BN defaults."""
    dims = [num_features] + [hidden_size] * (num_layers - 1) + [num_classes]
    weights, biases = [], []
    layer_keys = jax.random.split(key, num_layers)
    for l in range(num_layers):
        in_d, out_d = dims[l], dims[l + 1]
        kw, kb = jax.random.split(layer_keys[l])
        bound = 1.0 / jnp.sqrt(in_d)
        w = jax.random.uniform(kw, (in_d, out_d), jnp.float32, -bound, bound)
        b = jax.random.uniform(kb, (out_d,), jnp.float32, -bound, bound)
        if batch_norm and l < num_layers - 1:
            # Eval-mode BN folded host-side (default running stats => identity,
            # matching the reference where the BN is overwritten by Dropout).
            gamma = jnp.ones((out_d,), jnp.float32)
            beta = jnp.zeros((out_d,), jnp.float32)
            mean = jnp.zeros((out_d,), jnp.float32)
            var = jnp.ones((out_d,), jnp.float32)
            w, b = fold_batchnorm_into_linear(w, b, gamma, beta, mean, var)
        weights.append(w)
        biases.append(b.reshape(1, out_d))
    return weights, biases


def mlp_reference(x, weights, biases, negative_slope=0.01):
    """Pure-JAX f32 reference (eval-mode PyTorch semantics)."""
    h = x
    for l, (w, b) in enumerate(zip(weights, biases)):
        h = h @ w + b
        if l < len(weights) - 1:
            h = jnp.where(h >= 0, h, negative_slope * h)
    return jax.nn.log_softmax(h, axis=-1)


if __name__ == "__main__":
    # data['nodes'] : (num_nodes, num_features)
    B, NUM_FEATURES, HIDDEN, NUM_CLASSES, NUM_LAYERS = 64, 16, 32, 8, 3

    key = jax.random.PRNGKey(0)
    k_x, k_p = jax.random.split(key)

    nodes = jax.random.normal(k_x, (B, NUM_FEATURES), jnp.float32)
    weights, biases = init_mlp_params(
        k_p, NUM_FEATURES, NUM_CLASSES, NUM_LAYERS, HIDDEN, batch_norm=True)

    out = mlp_forward(nodes, weights, biases)          # whole batch in 1 grid step
    out = jax.block_until_ready(out)

    ref = mlp_reference(nodes, weights, biases)

    assert out.shape == (B, NUM_CLASSES)
    assert bool(jnp.all(jnp.isfinite(out)))
    # log-softmax rows must exponentiate-sum to 1
    assert bool(jnp.allclose(jnp.sum(jnp.exp(out), axis=-1), 1.0, atol=1e-4))
    # bf16 MXU inputs with f32 accumulation -> small deviation vs f32 reference
    assert bool(jnp.allclose(out, ref, atol=5e-2, rtol=5e-2))
    print("KERNEL_OK")
</pallas_src>

<mosaic_0001>
module attributes {stable_mosaic.version = 11 : i64} {
  func.func @mlp_kernel(%arg0: i32, %arg1: memref<64x16xf32, #tpu.memory_space<vmem>>, %arg2: memref<16x32xbf16, #tpu.memory_space<vmem>>, %arg3: memref<1x32xf32, #tpu.memory_space<vmem>>, %arg4: memref<32x32xbf16, #tpu.memory_space<vmem>>, %arg5: memref<1x32xf32, #tpu.memory_space<vmem>>, %arg6: memref<32x128xbf16, #tpu.memory_space<vmem>>, %arg7: memref<1x128xf32, #tpu.memory_space<vmem>>, %arg8: memref<64x128xf32, #tpu.memory_space<vmem>>) attributes {dimension_semantics = [#tpu.dimension_semantics<parallel>], iteration_bounds = array<i64: 1>, scalar_prefetch = 0 : i64, scratch_operands = 0 : i64, tpu.core_type = #tpu.core_type<tc>, window_params = [{transform_indices = @transform_0, window_bounds = array<i64: 64, 16>}, {pipeline_mode = #tpu.pipeline_mode<synchronous>, transform_indices = @transform_1, window_bounds = array<i64: 16, 32>}, {pipeline_mode = #tpu.pipeline_mode<synchronous>, transform_indices = @transform_2, window_bounds = array<i64: 1, 32>}, {pipeline_mode = #tpu.pipeline_mode<synchronous>, transform_indices = @transform_3, window_bounds = array<i64: 32, 32>}, {pipeline_mode = #tpu.pipeline_mode<synchronous>, transform_indices = @transform_4, window_bounds = array<i64: 1, 32>}, {pipeline_mode = #tpu.pipeline_mode<synchronous>, transform_indices = @transform_5, window_bounds = array<i64: 32, 128>}, {pipeline_mode = #tpu.pipeline_mode<synchronous>, transform_indices = @transform_6, window_bounds = array<i64: 1, 128>}, {transform_indices = @transform_7, window_bounds = array<i64: 64, 128>}]} {
    %c0 = arith.constant 0 : index
    %c0_0 = arith.constant 0 : index
    %0 = vector.load %arg1[%c0, %c0_0] : memref<64x16xf32, #tpu.memory_space<vmem>>, vector<64x16xf32>
    %c0_1 = arith.constant 0 : index
    %c0_2 = arith.constant 0 : index
    %1 = vector.load %arg2[%c0_1, %c0_2] : memref<16x32xbf16, #tpu.memory_space<vmem>>, vector<16x32xbf16>
    %c0_3 = arith.constant 0 : index
    %c0_4 = arith.constant 0 : index
    %2 = vector.load %arg3[%c0_3, %c0_4] : memref<1x32xf32, #tpu.memory_space<vmem>>, vector<1x32xf32>
    %3 = arith.truncf %0 : vector<64x16xf32> to vector<64x16xbf16>
    %cst = arith.constant dense<0.000000e+00> : vector<64x32xf32>
    %4 = tpu.matmul %3, %1, %cst {dimension_numbers = #tpu.dot_dimension_numbers<[1], [0], [0], [1], [0, 0, 1, 1], [], []>} : vector<64x16xbf16>, vector<16x32xbf16>, vector<64x32xf32> -> vector<64x32xf32>
    %5 = vector.broadcast %2 : vector<1x32xf32> to vector<64x32xf32>
    %6 = arith.addf %4, %5 : vector<64x32xf32>
    %cst_5 = arith.constant 0.00999999977 : f32
    %7 = vector.broadcast %cst_5 : f32 to vector<64x32xf32>
    %8 = arith.mulf %7, %6 : vector<64x32xf32>
    %9 = arith.maximumf %6, %8 : vector<64x32xf32>
    %c0_6 = arith.constant 0 : index
    %c0_7 = arith.constant 0 : index
    %10 = vector.load %arg4[%c0_6, %c0_7] : memref<32x32xbf16, #tpu.memory_space<vmem>>, vector<32x32xbf16>
    %c0_8 = arith.constant 0 : index
    %c0_9 = arith.constant 0 : index
    %11 = vector.load %arg5[%c0_8, %c0_9] : memref<1x32xf32, #tpu.memory_space<vmem>>, vector<1x32xf32>
    %12 = arith.truncf %9 : vector<64x32xf32> to vector<64x32xbf16>
    %cst_10 = arith.constant dense<0.000000e+00> : vector<64x32xf32>
    %13 = tpu.matmul %12, %10, %cst_10 {dimension_numbers = #tpu.dot_dimension_numbers<[1], [0], [0], [1], [0, 0, 1, 1], [], []>} : vector<64x32xbf16>, vector<32x32xbf16>, vector<64x32xf32> -> vector<64x32xf32>
    %14 = vector.broadcast %11 : vector<1x32xf32> to vector<64x32xf32>
    %15 = arith.addf %13, %14 : vector<64x32xf32>
    %cst_11 = arith.constant 0.00999999977 : f32
    %16 = vector.broadcast %cst_11 : f32 to vector<64x32xf32>
    %17 = arith.mulf %16, %15 : vector<64x32xf32>
    %18 = arith.maximumf %15, %17 : vector<64x32xf32>
    %c0_12 = arith.constant 0 : index
    %c0_13 = arith.constant 0 : index
    %19 = vector.load %arg6[%c0_12, %c0_13] : memref<32x128xbf16, #tpu.memory_space<vmem>>, vector<32x128xbf16>
    %c0_14 = arith.constant 0 : index
    %c0_15 = arith.constant 0 : index
    %20 = vector.load %arg7[%c0_14, %c0_15] : memref<1x128xf32, #tpu.memory_space<vmem>>, vector<1x128xf32>
    %21 = arith.truncf %18 : vector<64x32xf32> to vector<64x32xbf16>
    %cst_16 = arith.constant dense<0.000000e+00> : vector<64x128xf32>
    %22 = tpu.matmul %21, %19, %cst_16 {dimension_numbers = #tpu.dot_dimension_numbers<[1], [0], [0], [1], [0, 0, 1, 1], [], []>} : vector<64x32xbf16>, vector<32x128xbf16>, vector<64x128xf32> -> vector<64x128xf32>
    %23 = vector.broadcast %20 : vector<1x128xf32> to vector<64x128xf32>
    %24 = arith.addf %22, %23 : vector<64x128xf32>
    %cst_17 = arith.constant dense<0xFF800000> : vector<64xf32>
    %25 = vector.multi_reduction <maximumf>, %24, %cst_17 [1] : vector<64x128xf32> to vector<64xf32>
    %26 = vector.shape_cast %25 : vector<64xf32> to vector<64x1xf32>
    %27 = vector.broadcast %26 : vector<64x1xf32> to vector<64x128xf32>
    %28 = arith.subf %24, %27 : vector<64x128xf32>
    %29 = math.exp %28 : vector<64x128xf32>
    %cst_18 = arith.constant dense<0.000000e+00> : vector<64xf32>
    %30 = vector.multi_reduction <add>, %29, %cst_18 [1] : vector<64x128xf32> to vector<64xf32>
    %31 = vector.shape_cast %30 : vector<64xf32> to vector<64x1xf32>
    %32 = math.log %31 : vector<64x1xf32>
    %33 = vector.broadcast %32 : vector<64x1xf32> to vector<64x128xf32>
    %34 = arith.subf %28, %33 : vector<64x128xf32>
    %c0_19 = arith.constant 0 : index
    %c0_20 = arith.constant 0 : index
    %35 = vector.load %arg8[%c0_19, %c0_20] : memref<64x128xf32, #tpu.memory_space<vmem>>, vector<64x128xf32>
    tpu.vector_store %arg8[%c0_19, %c0_20], %34 {strides = array<i32>} : memref<64x128xf32, #tpu.memory_space<vmem>>, vector<64x128xf32>,
    return
  }
  func.func @transform_0(%arg0: i32) -> (i32, i32) {
    %c0_i32 = arith.constant 0 : i32
    %c0_i32_0 = arith.constant 0 : i32
    return %arg0, %c0_i32 : i32, i32
  }
  func.func @transform_1(%arg0: i32) -> (i32, i32) {
    %c0_i32 = arith.constant 0 : i32
    %c0_i32_0 = arith.constant 0 : i32
    %c0_i32_1 = arith.constant 0 : i32
    return %c0_i32, %c0_i32_0 : i32, i32
  }
  func.func @transform_2(%arg0: i32) -> (i32, i32) {
    %c0_i32 = arith.constant 0 : i32
    %c0_i32_0 = arith.constant 0 : i32
    %c0_i32_1 = arith.constant 0 : i32
    return %c0_i32, %c0_i32_0 : i32, i32
  }
  func.func @transform_3(%arg0: i32) -> (i32, i32) {
    %c0_i32 = arith.constant 0 : i32
    %c0_i32_0 = arith.constant 0 : i32
    %c0_i32_1 = arith.constant 0 : i32
    return %c0_i32, %c0_i32_0 : i32, i32
  }
  func.func @transform_4(%arg0: i32) -> (i32, i32) {
    %c0_i32 = arith.constant 0 : i32
    %c0_i32_0 = arith.constant 0 : i32
    %c0_i32_1 = arith.constant 0 : i32
    return %c0_i32, %c0_i32_0 : i32, i32
  }
  func.func @transform_5(%arg0: i32) -> (i32, i32) {
    %c0_i32 = arith.constant 0 : i32
    %c0_i32_0 = arith.constant 0 : i32
    %c0_i32_1 = arith.constant 0 : i32
    return %c0_i32, %c0_i32_0 : i32, i32
  }
  func.func @transform_6(%arg0: i32) -> (i32, i32) {
    %c0_i32 = arith.constant 0 : i32
    %c0_i32_0 = arith.constant 0 : i32
    %c0_i32_1 = arith.constant 0 : i32
    return %c0_i32, %c0_i32_0 : i32, i32
  }
  func.func @transform_7(%arg0: i32) -> (i32, i32) {
    %c0_i32 = arith.constant 0 : i32
    %c0_i32_0 = arith.constant 0 : i32
    return %arg0, %c0_i32 : i32, i32
  }
}

module attributes {stable_mosaic.version = 11 : i64} {
  func.func @mlp_kernel(%arg0: i32, %arg1: memref<64x16xf32, #tpu.memory_space<vmem>>, %arg2: memref<16x32xbf16, #tpu.memory_space<vmem>>, %arg3: memref<1x32xf32, #tpu.memory_space<vmem>>, %arg4: memref<32x32xbf16, #tpu.memory_space<vmem>>, %arg5: memref<1x32xf32, #tpu.memory_space<vmem>>, %arg6: memref<32x128xbf16, #tpu.memory_space<vmem>>, %arg7: memref<1x128xf32, #tpu.memory_space<vmem>>, %arg8: memref<64x128xf32, #tpu.memory_space<vmem>>) attributes {dimension_semantics = [#tpu.dimension_semantics<parallel>], iteration_bounds = array<i64: 1>, scalar_prefetch = 0 : i64, scratch_operands = 0 : i64, tpu.core_type = #tpu.core_type<tc>, window_params = [{transform_indices = @transform_0, window_bounds = array<i64: 64, 16>}, {pipeline_mode = #tpu.pipeline_mode<synchronous>, transform_indices = @transform_1, window_bounds = array<i64: 16, 32>}, {pipeline_mode = #tpu.pipeline_mode<synchronous>, transform_indices = @transform_2, window_bounds = array<i64: 1, 32>}, {pipeline_mode = #tpu.pipeline_mode<synchronous>, transform_indices = @transform_3, window_bounds = array<i64: 32, 32>}, {pipeline_mode = #tpu.pipeline_mode<synchronous>, transform_indices = @transform_4, window_bounds = array<i64: 1, 32>}, {pipeline_mode = #tpu.pipeline_mode<synchronous>, transform_indices = @transform_5, window_bounds = array<i64: 32, 128>}, {pipeline_mode = #tpu.pipeline_mode<synchronous>, transform_indices = @transform_6, window_bounds = array<i64: 1, 128>}, {transform_indices = @transform_7, window_bounds = array<i64: 64, 128>}]} {
    %c0 = arith.constant 0 : index
    %c0_0 = arith.constant 0 : index
    %0 = vector.load %arg1[%c0, %c0_0] : memref<64x16xf32, #tpu.memory_space<vmem>>, vector<64x16xf32>
    %c0_1 = arith.constant 0 : index
    %c0_2 = arith.constant 0 : index
    %1 = vector.load %arg2[%c0_1, %c0_2] : memref<16x32xbf16, #tpu.memory_space<vmem>>, vector<16x32xbf16>
    %c0_3 = arith.constant 0 : index
    %c0_4 = arith.constant 0 : index
    %2 = vector.load %arg3[%c0_3, %c0_4] : memref<1x32xf32, #tpu.memory_space<vmem>>, vector<1x32xf32>
    %3 = arith.truncf %0 : vector<64x16xf32> to vector<64x16xbf16>
    %cst = arith.constant dense<0.000000e+00> : vector<64x32xf32>
    %4 = tpu.matmul %3, %1, %cst {dimension_numbers = #tpu.dot_dimension_numbers<[1], [0], [0], [1], [0, 0, 1, 1], [], []>} : vector<64x16xbf16>, vector<16x32xbf16>, vector<64x32xf32> -> vector<64x32xf32>
    %5 = vector.broadcast %2 : vector<1x32xf32> to vector<64x32xf32>
    %6 = arith.addf %4, %5 : vector<64x32xf32>
    %cst_5 = arith.constant 0.00999999977 : f32
    %7 = vector.broadcast %cst_5 : f32 to vector<64x32xf32>
    %8 = arith.mulf %7, %6 : vector<64x32xf32>
    %9 = arith.maximumf %6, %8 : vector<64x32xf32>
    %c0_6 = arith.constant 0 : index
    %c0_7 = arith.constant 0 : index
    %10 = vector.load %arg4[%c0_6, %c0_7] : memref<32x32xbf16, #tpu.memory_space<vmem>>, vector<32x32xbf16>
    %c0_8 = arith.constant 0 : index
    %c0_9 = arith.constant 0 : index
    %11 = vector.load %arg5[%c0_8, %c0_9] : memref<1x32xf32, #tpu.memory_space<vmem>>, vector<1x32xf32>
    %12 = arith.truncf %9 : vector<64x32xf32> to vector<64x32xbf16>
    %cst_10 = arith.constant dense<0.000000e+00> : vector<64x32xf32>
    %13 = tpu.matmul %12, %10, %cst_10 {dimension_numbers = #tpu.dot_dimension_numbers<[1], [0], [0], [1], [0, 0, 1, 1], [], []>} : vector<64x32xbf16>, vector<32x32xbf16>, vector<64x32xf32> -> vector<64x32xf32>
    %14 = vector.broadcast %11 : vector<1x32xf32> to vector<64x32xf32>
    %15 = arith.addf %13, %14 : vector<64x32xf32>
    %cst_11 = arith.constant 0.00999999977 : f32
    %16 = vector.broadcast %cst_11 : f32 to vector<64x32xf32>
    %17 = arith.mulf %16, %15 : vector<64x32xf32>
    %18 = arith.maximumf %15, %17 : vector<64x32xf32>
    %c0_12 = arith.constant 0 : index
    %c0_13 = arith.constant 0 : index
    %19 = vector.load %arg6[%c0_12, %c0_13] : memref<32x128xbf16, #tpu.memory_space<vmem>>, vector<32x128xbf16>
    %c0_14 = arith.constant 0 : index
    %c0_15 = arith.constant 0 : index
    %20 = vector.load %arg7[%c0_14, %c0_15] : memref<1x128xf32, #tpu.memory_space<vmem>>, vector<1x128xf32>
    %21 = arith.truncf %18 : vector<64x32xf32> to vector<64x32xbf16>
    %cst_16 = arith.constant dense<0.000000e+00> : vector<64x128xf32>
    %22 = tpu.matmul %21, %19, %cst_16 {dimension_numbers = #tpu.dot_dimension_numbers<[1], [0], [0], [1], [0, 0, 1, 1], [], []>} : vector<64x32xbf16>, vector<32x128xbf16>, vector<64x128xf32> -> vector<64x128xf32>
    %23 = vector.broadcast %20 : vector<1x128xf32> to vector<64x128xf32>
    %24 = arith.addf %22, %23 : vector<64x128xf32>
    %cst_17 = arith.constant dense<0xFF800000> : vector<64xf32>
    %25 = vector.multi_reduction <maximumf>, %24, %cst_17 [1] : vector<64x128xf32> to vector<64xf32>
    %26 = vector.shape_cast %25 : vector<64xf32> to vector<64x1xf32>
    %27 = vector.broadcast %26 : vector<64x1xf32> to vector<64x128xf32>
    %28 = arith.subf %24, %27 : vector<64x128xf32>
    %29 = math.exp %28 : vector<64x128xf32>
    %cst_18 = arith.constant dense<0.000000e+00> : vector<64xf32>
    %30 = vector.multi_reduction <add>, %29, %cst_18 [1] : vector<64x128xf32> to vector<64xf32>
    %31 = vector.shape_cast %30 : vector<64xf32> to vector<64x1xf32>
    %32 = math.log %31 : vector<64x1xf32>
    %33 = vector.broadcast %32 : vector<64x1xf32> to vector<64x128xf32>
    %34 = arith.subf %28, %33 : vector<64x128xf32>
    %c0_19 = arith.constant 0 : index
    %c0_20 = arith.constant 0 : index
    %35 = vector.load %arg8[%c0_19, %c0_20] : memref<64x128xf32, #tpu.memory_space<vmem>>, vector<64x128xf32>
    tpu.vector_store %arg8[%c0_19, %c0_20], %34 {strides = array<i32>} : memref<64x128xf32, #tpu.memory_space<vmem>>, vector<64x128xf32>,
    return
  }
  func.func @transform_0(%arg0: i32) -> (i32, i32) {
    %c0_i32 = arith.constant 0 : i32
    %c0_i32_0 = arith.constant 0 : i32
    return %arg0, %c0_i32 : i32, i32
  }
  func.func @transform_1(%arg0: i32) -> (i32, i32) {
    %c0_i32 = arith.constant 0 : i32
    %c0_i32_0 = arith.constant 0 : i32
    %c0_i32_1 = arith.constant 0 : i32
    return %c0_i32, %c0_i32_0 : i32, i32
  }
  func.func @transform_2(%arg0: i32) -> (i32, i32) {
    %c0_i32 = arith.constant 0 : i32
    %c0_i32_0 = arith.constant 0 : i32
    %c0_i32_1 = arith.constant 0 : i32
    return %c0_i32, %c0_i32_0 : i32, i32
  }
  func.func @transform_3(%arg0: i32) -> (i32, i32) {
    %c0_i32 = arith.constant 0 : i32
    %c0_i32_0 = arith.constant 0 : i32
    %c0_i32_1 = arith.constant 0 : i32
    return %c0_i32, %c0_i32_0 : i32, i32
  }
  func.func @transform_4(%arg0: i32) -> (i32, i32) {
    %c0_i32 = arith.constant 0 : i32
    %c0_i32_0 = arith.constant 0 : i32
    %c0_i32_1 = arith.constant 0 : i32
    return %c0_i32, %c0_i32_0 : i32, i32
  }
  func.func @transform_5(%arg0: i32) -> (i32, i32) {
    %c0_i32 = arith.constant 0 : i32
    %c0_i32_0 = arith.constant 0 : i32
    %c0_i32_1 = arith.constant 0 : i32
    return %c0_i32, %c0_i32_0 : i32, i32
  }
  func.func @transform_6(%arg0: i32) -> (i32, i32) {
    %c0_i32 = arith.constant 0 : i32
    %c0_i32_0 = arith.constant 0 : i32
    %c0_i32_1 = arith.constant 0 : i32
    return %c0_i32, %c0_i32_0 : i32, i32
  }
  func.func @transform_7(%arg0: i32) -> (i32, i32) {
    %c0_i32 = arith.constant 0 : i32
    %c0_i32_0 = arith.constant 0 : i32
    return %arg0, %c0_i32 : i32, i32
  }
}

</mosaic_0001>

<bundles_post_ra>
// kernel: tpu_custom_call.1
= control target key start
LH: loop header
LB: loop body
LE: loop exit
PB: predicated region body
PF: predicated region fallthrough
CT: control target
= control target key end

     0   :  { %vm52_vm0 = vcmask 130048   ;;  %s570_s0 = inlined_call_operand.vmem [shape: f32[64,16], index: 0, kind: input, shape index: {}]   ;;  %s571_s1 = inlined_call_operand.vmem [shape: bf16[16,32], index: 1, kind: input, shape index: {}]   ;;  %s572_s2 = inlined_call_operand.vmem [shape: f32[1,32], index: 2, kind: input, shape index: {}]   ;;  %s573_s3 = inlined_call_operand.vmem [shape: bf16[32,32], index: 3, kind: input, shape index: {}]   ;;  %s574_s4 = inlined_call_operand.vmem [shape: f32[1,32], index: 4, kind: input, shape index: {}]   ;;  %s575_s5 = inlined_call_operand.vmem [shape: bf16[32,128], index: 5, kind: input, shape index: {}]   ;;  %s576_s6 = inlined_call_operand.vmem [shape: f32[1,128], index: 6, kind: input, shape index: {}]   ;;  %s577_s7 = inlined_call_operand.hbm [shape: f32[64,128], index: 7, kind: output, shape index: {}]  }
   0x1   :  { %v395_v0 = vld [vmem:[%s571_s1] sm:$0xff]  ;;  %v29_v2 = vld [vmem:[%s570_s0 + $0x8] sm:$0xff] }
   0x2   :  { %v28_v1 = vld [vmem:[%s570_s0] sm:$0xff]  ;;  %72 = vmatpush.bf16.msra.mxu0 %v395_v0 }
   0x3   :  { %v39_v3 = vpack.c.bf16 %v29_v2, %v28_v1 }
   0x4   :  { %12 = vsyncpa [#allocation3], 0  ;;  %v30_v4 = vld [vmem:[%s570_s0 + $0x10] sm:$0xff]  ;;  %v31_v5 = vld [vmem:[%s570_s0 + $0x18] sm:$0xff]  ;;  %vm134_vm1 = vcmask 261120   ;;  %s351_s30 = sshll.u32 %s577_s7, 4  ;;  %s352_s30 = int_to_ptr.hbm [resolvable:$true] %s351_s30 }
   0x5   :  { %367 = vmatmul.msk.bf16.vlgmr.msra.gmra.mxu0 %vm52_vm0, %v39_v3  ;;  %v40_v6 = vpack.c.bf16 %v31_v5, %v30_v4  ;;  %v32_v7 = vld [vmem:[%s570_s0 + $0x20] sm:$0xff]  ;;  %v33_v8 = vld [vmem:[%s570_s0 + $0x28] sm:$0xff]  ;;  %v34_v10 = vld [vmem:[%s570_s0 + $0x30] sm:$0xff]  ;;  %s469_s8 = smov 128   ;;  %s470_s9 = smov 8  }
   0x6   :  { %v41_v9 = vpack.c.bf16 %v33_v8, %v32_v7  ;;  %v35_v11 = vld [vmem:[%s570_s0 + $0x38] sm:$0xff]  ;;  %v397_v13 = vld [vmem:[%s573_s3 + $0x8] sm:$0xff]  ;;  %v396_v14 = vld [vmem:[%s573_s3] sm:$0xff] }
   0x7   :  { %v42_v12 = vpack.c.bf16 %v35_v11, %v34_v10  ;;  %153 = vmatpush.bf16.msra.mxu1 %v397_v13  ;;  %400 = vmatpush.bf16.msra.mxu3 %v397_v13  ;;  %v407_v16 = vld [vmem:[%s572_s2] ss:$0 sm:$0xff]  ;;  %v399_v52 = vld [vmem:[%s575_s5 + $0x8] sm:$0xff] }
   0x8   :  { %402 = vmatpush.bf16.msra.mxu2 %v399_v52  ;;  %v398_v53 = vld [vmem:[%s575_s5] sm:$0xff] }
   0x9   :  { %v408_v55 = vld [vmem:[%s574_s4] ss:$0 sm:$0xff] }
   0xb   :  { %154 = vmatpush.bf16.msra.mxu1 %v396_v14  ;;  %401 = vmatpush.bf16.msra.mxu3 %v396_v14 }
   0xc   :  { %403 = vmatpush.bf16.msra.mxu2 %v398_v53 }
   0xf   :  { %234 = vmatpush.bf16.msrb.mxu1 %v399_v52 }
  0x13   :  { %235 = vmatpush.bf16.msrb.mxu1 %v398_v53 }
  0x15   :  { %368 = vmatmul.msk.bf16.gmra.mxu0 %vm52_vm0, %v40_v6 }
  0x25   :  { %369 = vmatmul.msk.bf16.gmra.mxu0 %vm52_vm0, %v41_v9 }
  0x35   :  { %370 = vmatmul.msk.bf16.gmra.mxu0 %vm52_vm0, %v42_v12 }
  0x82   :  { %v74_v15 = vpop.f32.mrf.mxu0 }
  0x83   :  { %v75_v17 = vadd.f32 %v407_v16, %v74_v15 }
  0x85   :  { %v94_v19 = vmul.f32 0.01, %v75_v17 }
  0x87   :  { %v102_v22 = vmax.f32 %v75_v17, %v94_v19 }
  0x8a   :  { %v76_v18 = vpop.f32.mrf.mxu0 }
  0x8b   :  { %v77_v20 = vadd.f32 %v407_v16, %v76_v18 }
  0x8d   :  { %v95_v21 = vmul.f32 0.01, %v77_v20 }
  0x8f   :  { %v103_v23 = vmax.f32 %v77_v20, %v95_v21 }
  0x91   :  { %v115_v24 = vpack.c.bf16 %v103_v23, %v102_v22 }
  0x92   :  { %v79_v25 = vpop.f32.mrf.mxu0 }
  0x93   :  { %379 = vmatmul.msk.bf16.vlgmr.msra.gmra.mxu1 %vm134_vm1, %v115_v24  ;;  %v80_v26 = vadd.f32 %v407_v16, %v79_v25 }
  0x95   :  { %v96_v28 = vmul.f32 0.01, %v80_v26 }
  0x97   :  { %v104_v31 = vmax.f32 %v80_v26, %v96_v28 }
  0x9a   :  { %v81_v27 = vpop.f32.mrf.mxu0 }
  0x9b   :  { %v82_v29 = vadd.f32 %v407_v16, %v81_v27  ;;  %v409_v27 = vld [vmem:[%s576_s6] ss:$0 sm:$0xff]  ;;  %s468_s6 = smov [#allocation2]  }
  0x9c   :  { %s349_s27 = sshll.u32 %s468_s6, 4  ;;  %s350_s27 = int_to_ptr.vmem [resolvable:$true] %s349_s27 }
  0x9d   :  { %v97_v30 = vmul.f32 0.01, %v82_v29 }
  0x9f   :  { %v105_v32 = vmax.f32 %v82_v29, %v97_v30 }
  0xa1   :  { %v116_v33 = vpack.c.bf16 %v105_v32, %v104_v31 }
  0xa2   :  { %v84_v34 = vpop.f32.mrf.mxu0 }
  0xa3   :  { %380 = vmatmul.msk.bf16.vlgmr.msra.gmra.mxu3 %vm134_vm1, %v116_v33  ;;  %v85_v35 = vadd.f32 %v407_v16, %v84_v34 }
  0xa5   :  { %v98_v37 = vmul.f32 0.01, %v85_v35 }
  0xa7   :  { %v106_v40 = vmax.f32 %v85_v35, %v98_v37 }
  0xaa   :  { %v86_v36 = vpop.f32.mrf.mxu0 }
  0xab   :  { %v87_v38 = vadd.f32 %v407_v16, %v86_v36 }
  0xad   :  { %v99_v39 = vmul.f32 0.01, %v87_v38 }
  0xaf   :  { %v107_v41 = vmax.f32 %v87_v38, %v99_v39 }
  0xb1   :  { %v117_v42 = vpack.c.bf16 %v107_v41, %v106_v40 }
  0xb2   :  { %v89_v43 = vpop.f32.mrf.mxu0 }
  0xb3   :  { %381 = vmatmul.msk.bf16.gmra.mxu3 %vm134_vm1, %v117_v42  ;;  %v90_v44 = vadd.f32 %v407_v16, %v89_v43 }
  0xb5   :  { %v100_v46 = vmul.f32 0.01, %v90_v44 }
  0xb7   :  { %v108_v49 = vmax.f32 %v90_v44, %v100_v46 }
  0xba   :  { %v91_v45 = vpop.f32.mrf.mxu0 }
  0xbb   :  { %v92_v47 = vadd.f32 %v407_v16, %v91_v45 }
  0xbd   :  { %v101_v48 = vmul.f32 0.01, %v92_v47 }
  0xbf   :  { %v109_v50 = vmax.f32 %v92_v47, %v101_v48 }
  0xc1   :  { %v118_v51 = vpack.c.bf16 %v109_v50, %v108_v49 }
  0xc3   :  { %382 = vmatmul.msk.bf16.gmra.mxu3 %vm134_vm1, %v118_v51 }
 0x110   :  { %v156_v54 = vpop.f32.mrf.mxu1 }
 0x111   :  { %v157_v56 = vadd.f32 %v408_v55, %v156_v54 }
 0x113   :  { %v176_v58 = vmul.f32 0.01, %v157_v56 }
 0x115   :  { %v184_v61 = vmax.f32 %v157_v56, %v176_v58 }
 0x118   :  { %v158_v57 = vpop.f32.mrf.mxu1 }
 0x119   :  { %v159_v59 = vadd.f32 %v408_v55, %v158_v57 }
 0x11b   :  { %v177_v60 = vmul.f32 0.01, %v159_v59 }
 0x11d   :  { %v185_v62 = vmax.f32 %v159_v59, %v177_v60 }
 0x11f   :  { %v197_v63 = vpack.c.bf16 %v185_v62, %v184_v61 }
 0x121   :  { %391 = vmatmul.msk.bf16.vlgmr.msrb.gmra.mxu1 %vm134_vm1, %v197_v63 }
 0x126   :  { %v161_v0 = vpop.f32.mrf.mxu3 }
 0x127   :  { %v162_v1 = vadd.f32 %v408_v55, %v161_v0 }
 0x129   :  { %v178_v3 = vmul.f32 0.01, %v162_v1 }
 0x12b   :  { %v186_v6 = vmax.f32 %v162_v1, %v178_v3 }
 0x12e   :  { %v163_v2 = vpop.f32.mrf.mxu3 }
 0x12f   :  { %v164_v4 = vadd.f32 %v408_v55, %v163_v2 }
 0x131   :  { %v179_v5 = vmul.f32 0.01, %v164_v4 }
 0x133   :  { %v187_v7 = vmax.f32 %v164_v4, %v179_v5 }
 0x135   :  { %v198_v8 = vpack.c.bf16 %v187_v7, %v186_v6 }
 0x136   :  { %v166_v9 = vpop.f32.mrf.mxu3 }
 0x137   :  { %392 = vmatmul.msk.bf16.vlgmr.msra.gmra.mxu2 %vm134_vm1, %v198_v8  ;;  %v167_v10 = vadd.f32 %v408_v55, %v166_v9 }
 0x139   :  { %v180_v12 = vmul.f32 0.01, %v167_v10 }
 0x13b   :  { %v188_v15 = vmax.f32 %v167_v10, %v180_v12 }
 0x13e   :  { %v168_v11 = vpop.f32.mrf.mxu3 }
 0x13f   :  { %v169_v13 = vadd.f32 %v408_v55, %v168_v11 }
 0x141   :  { %v181_v14 = vmul.f32 0.01, %v169_v13 }
 0x143   :  { %v189_v16 = vmax.f32 %v169_v13, %v181_v14 }
 0x145   :  { %v199_v17 = vpack.c.bf16 %v189_v16, %v188_v15 }
 0x146   :  { %v171_v18 = vpop.f32.mrf.mxu3 }
 0x147   :  { %393 = vmatmul.msk.bf16.gmra.mxu2 %vm134_vm1, %v199_v17  ;;  %v172_v19 = vadd.f32 %v408_v55, %v171_v18 }
 0x149   :  { %v182_v21 = vmul.f32 0.01, %v172_v19 }
 0x14b   :  { %v190_v24 = vmax.f32 %v172_v19, %v182_v21 }
 0x14e   :  { %v173_v20 = vpop.f32.mrf.mxu3 }
 0x14f   :  { %v174_v22 = vadd.f32 %v408_v55, %v173_v20 }
 0x151   :  { %v183_v23 = vmul.f32 0.01, %v174_v22 }
 0x153   :  { %v191_v25 = vmax.f32 %v174_v22, %v183_v23 }
 0x155   :  { %v200_v26 = vpack.c.bf16 %v191_v25, %v190_v24 }
 0x157   :  { %394 = vmatmul.msk.bf16.gmra.mxu2 %vm134_vm1, %v200_v26 }
 0x19e   :  { %v237_v28 = vpop.f32.mrf.mxu1 }
 0x19f   :  { %v238_v29 = vadd.f32 %v409_v27, %v237_v28 }
 0x1a1   :  { %257 = vmax.xlane.f32.xlu0 %v238_v29 }
 0x1a6   :  { %v239_v30 = vpop.f32.mrf.mxu1 }
 0x1a7   :  { %v240_v31 = vadd.f32 %v409_v27, %v239_v30 }
 0x1a9   :  { %259 = vmax.xlane.f32.xlu0 %v240_v31 }
 0x1ba   :  { %v242_v32 = vpop.f32.mrf.mxu2 }
 0x1bb   :  { %v243_v33 = vadd.f32 %v409_v27, %v242_v32 }
 0x1bd   :  { %261 = vmax.xlane.f32.xlu1 %v243_v33 }
 0x1c2   :  { %v244_v34 = vpop.f32.mrf.mxu2 }
 0x1c3   :  { %v245_v35 = vadd.f32 %v409_v27, %v244_v34 }
 0x1c5   :  { %263 = vmax.xlane.f32.xlu1 %v245_v35 }
 0x1ca   :  { %v247_v36 = vpop.f32.mrf.mxu2 }
 0x1cb   :  { %v248_v37 = vadd.f32 %v409_v27, %v247_v36 }
 0x1cd   :  { %265 = vmax.xlane.f32.xlu2 %v248_v37 }
 0x1d2   :  { %v249_v38 = vpop.f32.mrf.mxu2 }
 0x1d3   :  { %v250_v39 = vadd.f32 %v409_v27, %v249_v38 }
 0x1d5   :  { %267 = vmax.xlane.f32.xlu2 %v250_v39 }
 0x1da   :  { %v252_v40 = vpop.f32.mrf.mxu2 }
 0x1db   :  { %v253_v41 = vadd.f32 %v409_v27, %v252_v40 }
 0x1dd   :  { %269 = vmax.xlane.f32.xlu0 %v253_v41 }
 0x1e2   :  { %v254_v42 = vpop.f32.mrf.mxu2 }
 0x1e3   :  { %v255_v43 = vadd.f32 %v409_v27, %v254_v42 }
 0x1e5   :  { %271 = vmax.xlane.f32.xlu1 %v255_v43 }
 0x214   :  { %v258_v44 = vpop.xlane.xlu0 %257 }
 0x215   :  { %v273_v45 = vsub.f32 %v238_v29, %v258_v44 }
 0x217   :  { %v281_v46 = vmul.f32 1.442695, %v273_v45 }
 0x219   :  { %410 = vpow2.f32 %v281_v46 }
 0x21c   :  { %v260_v47 = vpop.xlane.xlu0 %259 }
 0x21d   :  { %v274_v48 = vsub.f32 %v240_v31, %v260_v47 }
 0x21f   :  { %v411_v49 = vpop.eup %410  ;;  %v283_v50 = vmul.f32 1.442695, %v274_v48 }
 0x220   :  { %297 = vadd.xlane.f32.xlu2 %v411_v49 }
 0x221   :  { %412 = vpow2.f32 %v283_v50 }
 0x227   :  { %v413_v51 = vpop.eup %412 }
 0x228   :  { %299 = vadd.xlane.f32.xlu0 %v413_v51 }
 0x230   :  { %v262_v52 = vpop.xlane.xlu1 %261 }
 0x231   :  { %v275_v53 = vsub.f32 %v243_v33, %v262_v52 }
 0x233   :  { %v285_v54 = vmul.f32 1.442695, %v275_v53 }
 0x235   :  { %414 = vpow2.f32 %v285_v54 }
 0x238   :  { %v264_v55 = vpop.xlane.xlu1 %263 }
 0x239   :  { %v276_v56 = vsub.f32 %v245_v35, %v264_v55 }
 0x23b   :  { %v415_v57 = vpop.eup %414  ;;  %v287_v58 = vmul.f32 1.442695, %v276_v56 }
 0x23c   :  { %301 = vadd.xlane.f32.xlu1 %v415_v57 }
 0x23d   :  { %416 = vpow2.f32 %v287_v58 }
 0x240   :  { %v266_v59 = vpop.xlane.xlu2 %265 }
 0x241   :  { %v277_v60 = vsub.f32 %v248_v37, %v266_v59 }
 0x243   :  { %v417_v61 = vpop.eup %416  ;;  %v289_v62 = vmul.f32 1.442695, %v277_v60 }
 0x244   :  { %303 = vadd.xlane.f32.xlu2 %v417_v61 }
 0x245   :  { %418 = vpow2.f32 %v289_v62 }
 0x248   :  { %v268_v63 = vpop.xlane.xlu2 %267 }
 0x249   :  { %v278_v0 = vsub.f32 %v250_v39, %v268_v63 }
 0x24b   :  { %v419_v1 = vpop.eup %418  ;;  %v291_v2 = vmul.f32 1.442695, %v278_v0 }
 0x24c   :  { %305 = vadd.xlane.f32.xlu0 %v419_v1 }
 0x24d   :  { %420 = vpow2.f32 %v291_v2 }
 0x250   :  { %v270_v3 = vpop.xlane.xlu0 %269 }
 0x251   :  { %v279_v4 = vsub.f32 %v253_v41, %v270_v3 }
 0x253   :  { %v421_v5 = vpop.eup %420  ;;  %v293_v6 = vmul.f32 1.442695, %v279_v4 }
 0x254   :  { %307 = vadd.xlane.f32.xlu1 %v421_v5 }
 0x255   :  { %422 = vpow2.f32 %v293_v6 }
 0x258   :  { %v272_v7 = vpop.xlane.xlu1 %271 }
 0x259   :  { %v280_v8 = vsub.f32 %v255_v43, %v272_v7 }
 0x25b   :  { %v423_v9 = vpop.eup %422  ;;  %v295_v10 = vmul.f32 1.442695, %v280_v8 }
 0x25c   :  { %309 = vadd.xlane.f32.xlu2 %v423_v9 }
 0x25d   :  { %424 = vpow2.f32 %v295_v10 }
 0x263   :  { %v425_v11 = vpop.eup %424 }
 0x264   :  { %311 = vadd.xlane.f32.xlu0 %v425_v11 }
 0x293   :  { %v298_v12 = vpop.xlane.xlu2 %297 }
 0x294   :  { %426 = vlog2.f32 %v298_v12 }
 0x29a   :  { %v427_v13 = vpop.eup %426 }
 0x29b   :  { %v314_v14 = vmul.f32 0.6931472, %v427_v13  ;;  %v300_v15 = vpop.xlane.xlu0 %299 }
 0x29c   :  { %428 = vlog2.f32 %v300_v15 }
 0x29d   :  { %v329_v16 = vsub.f32 %v273_v45, %v314_v14 }
 0x29f   :  { %337 = vst [vmem:[#allocation2] sm:$0xff] %v329_v16 }
 0x2a2   :  { %v429_v17 = vpop.eup %428 }
 0x2a3   :  { %v316_v18 = vmul.f32 0.6931472, %v429_v17 }
 0x2a5   :  { %v330_v19 = vsub.f32 %v274_v48, %v316_v18 }
 0x2a7   :  { %338 = vst [vmem:[#allocation2 + $0x8] sm:$0xff] %v330_v19 }
 0x2af   :  { %v302_v20 = vpop.xlane.xlu1 %301 }
 0x2b0   :  { %430 = vlog2.f32 %v302_v20 }
 0x2b6   :  { %v431_v21 = vpop.eup %430 }
 0x2b7   :  { %v318_v22 = vmul.f32 0.6931472, %v431_v21  ;;  %v304_v23 = vpop.xlane.xlu2 %303 }
 0x2b8   :  { %432 = vlog2.f32 %v304_v23 }
 0x2b9   :  { %v331_v24 = vsub.f32 %v275_v53, %v318_v22 }
 0x2bb   :  { %339 = vst [vmem:[#allocation2 + $0x10] sm:$0xff] %v331_v24 }
 0x2be   :  { %v433_v25 = vpop.eup %432 }
 0x2bf   :  { %v320_v26 = vmul.f32 0.6931472, %v433_v25  ;;  %v306_v27 = vpop.xlane.xlu0 %305 }
 0x2c0   :  { %434 = vlog2.f32 %v306_v27 }
 0x2c1   :  { %v332_v28 = vsub.f32 %v276_v56, %v320_v26 }
 0x2c3   :  { %340 = vst [vmem:[#allocation2 + $0x18] sm:$0xff] %v332_v28 }
 0x2c6   :  { %v435_v29 = vpop.eup %434 }
 0x2c7   :  { %v322_v30 = vmul.f32 0.6931472, %v435_v29  ;;  %v308_v31 = vpop.xlane.xlu1 %307 }
 0x2c8   :  { %436 = vlog2.f32 %v308_v31 }
 0x2c9   :  { %v333_v32 = vsub.f32 %v277_v60, %v322_v30 }
 0x2cb   :  { %341 = vst [vmem:[#allocation2 + $0x20] sm:$0xff] %v333_v32 }
 0x2ce   :  { %v437_v33 = vpop.eup %436 }
 0x2cf   :  { %v324_v34 = vmul.f32 0.6931472, %v437_v33  ;;  %v310_v35 = vpop.xlane.xlu2 %309 }
 0x2d0   :  { %438 = vlog2.f32 %v310_v35 }
 0x2d1   :  { %v334_v36 = vsub.f32 %v278_v0, %v324_v34 }
 0x2d3   :  { %342 = vst [vmem:[#allocation2 + $0x28] sm:$0xff] %v334_v36 }
 0x2d6   :  { %v439_v37 = vpop.eup %438 }
 0x2d7   :  { %v326_v38 = vmul.f32 0.6931472, %v439_v37  ;;  %v312_v39 = vpop.xlane.xlu0 %311 }
 0x2d8   :  { %440 = vlog2.f32 %v312_v39 }
 0x2d9   :  { %v335_v40 = vsub.f32 %v279_v4, %v326_v38 }
 0x2db   :  { %343 = vst [vmem:[#allocation2 + $0x30] sm:$0xff] %v335_v40 }
 0x2de   :  { %v441_v41 = vpop.eup %440 }
 0x2df   :  { %v328_v42 = vmul.f32 0.6931472, %v441_v41 }
 0x2e1   :  { %v336_v43 = vsub.f32 %v280_v8, %v328_v42 }
 0x2e3   :  { %344 = vst [vmem:[#allocation2 + $0x38] sm:$0xff] %v336_v43 }
 0x2e4   :  { %357 = dma.vmem_to_hbm [thread:$0]  %s350_s27, 1024, %s352_s30, [#allocation3], %s469_s8, %s469_s8, %s470_s9  }
 0x2e5   :  { %466 = dma.done.wait [#allocation3], 1024  }
 0x2e6   :  { %467 = vsyncadd [#allocation3], 4294966272 }
 0x2e7   :  { %362 = vsyncpa [#allocation3], 1 }

// kernel: tpu_custom_call.1
= control target key start
LH: loop header
LB: loop body
LE: loop exit
PB: predicated region body
PF: predicated region fallthrough
CT: control target
= control target key end

     0   :  { %vm52_vm0 = vcmask 130048   ;;  %s570_s0 = inlined_call_operand.vmem [shape: f32[64,16], index: 0, kind: input, shape index: {}]   ;;  %s571_s1 = inlined_call_operand.vmem [shape: bf16[16,32], index: 1, kind: input, shape index: {}]   ;;  %s572_s2 = inlined_call_operand.vmem [shape: f32[1,32], index: 2, kind: input, shape index: {}]   ;;  %s573_s3 = inlined_call_operand.vmem [shape: bf16[32,32], index: 3, kind: input, shape index: {}]   ;;  %s574_s4 = inlined_call_operand.vmem [shape: f32[1,32], index: 4, kind: input, shape index: {}]   ;;  %s575_s5 = inlined_call_operand.vmem [shape: bf16[32,128], index: 5, kind: input, shape index: {}]   ;;  %s576_s6 = inlined_call_operand.vmem [shape: f32[1,128], index: 6, kind: input, shape index: {}]   ;;  %s577_s7 = inlined_call_operand.hbm [shape: f32[64,128], index: 7, kind: output, shape index: {}]  }
   0x1   :  { %v395_v0 = vld [vmem:[%s571_s1] sm:$0xff]  ;;  %v29_v2 = vld [vmem:[%s570_s0 + $0x8] sm:$0xff] }
   0x2   :  { %v28_v1 = vld [vmem:[%s570_s0] sm:$0xff]  ;;  %72 = vmatpush.bf16.msra.mxu0 %v395_v0 }
   0x3   :  { %v39_v3 = vpack.c.bf16 %v29_v2, %v28_v1 }
   0x4   :  { %12 = vsyncpa [#allocation3], 0  ;;  %v30_v4 = vld [vmem:[%s570_s0 + $0x10] sm:$0xff]  ;;  %v31_v5 = vld [vmem:[%s570_s0 + $0x18] sm:$0xff]  ;;  %vm134_vm1 = vcmask 261120   ;;  %s351_s30 = sshll.u32 %s577_s7, 4  ;;  %s352_s30 = int_to_ptr.hbm [resolvable:$true] %s351_s30 }
   0x5   :  { %367 = vmatmul.msk.bf16.vlgmr.msra.gmra.mxu0 %vm52_vm0, %v39_v3  ;;  %v40_v6 = vpack.c.bf16 %v31_v5, %v30_v4  ;;  %v32_v7 = vld [vmem:[%s570_s0 + $0x20] sm:$0xff]  ;;  %v33_v8 = vld [vmem:[%s570_s0 + $0x28] sm:$0xff]  ;;  %v34_v10 = vld [vmem:[%s570_s0 + $0x30] sm:$0xff]  ;;  %s469_s8 = smov 128   ;;  %s470_s9 = smov 8  }
   0x6   :  { %v41_v9 = vpack.c.bf16 %v33_v8, %v32_v7  ;;  %v35_v11 = vld [vmem:[%s570_s0 + $0x38] sm:$0xff]  ;;  %v397_v13 = vld [vmem:[%s573_s3 + $0x8] sm:$0xff]  ;;  %v396_v14 = vld [vmem:[%s573_s3] sm:$0xff] }
   0x7   :  { %v42_v12 = vpack.c.bf16 %v35_v11, %v34_v10  ;;  %153 = vmatpush.bf16.msra.mxu1 %v397_v13  ;;  %400 = vmatpush.bf16.msra.mxu3 %v397_v13  ;;  %v407_v16 = vld [vmem:[%s572_s2] ss:$0 sm:$0xff]  ;;  %v399_v52 = vld [vmem:[%s575_s5 + $0x8] sm:$0xff] }
   0x8   :  { %402 = vmatpush.bf16.msra.mxu2 %v399_v52  ;;  %v398_v53 = vld [vmem:[%s575_s5] sm:$0xff] }
   0x9   :  { %v408_v55 = vld [vmem:[%s574_s4] ss:$0 sm:$0xff] }
   0xb   :  { %154 = vmatpush.bf16.msra.mxu1 %v396_v14  ;;  %401 = vmatpush.bf16.msra.mxu3 %v396_v14 }
   0xc   :  { %403 = vmatpush.bf16.msra.mxu2 %v398_v53 }
   0xf   :  { %234 = vmatpush.bf16.msrb.mxu1 %v399_v52 }
  0x13   :  { %235 = vmatpush.bf16.msrb.mxu1 %v398_v53 }
  0x15   :  { %368 = vmatmul.msk.bf16.gmra.mxu0 %vm52_vm0, %v40_v6 }
  0x25   :  { %369 = vmatmul.msk.bf16.gmra.mxu0 %vm52_vm0, %v41_v9 }
  0x35   :  { %370 = vmatmul.msk.bf16.gmra.mxu0 %vm52_vm0, %v42_v12 }
  0x82   :  { %v74_v15 = vpop.f32.mrf.mxu0 }
  0x83   :  { %v75_v17 = vadd.f32 %v407_v16, %v74_v15 }
  0x85   :  { %v94_v19 = vmul.f32 0.01, %v75_v17 }
  0x87   :  { %v102_v22 = vmax.f32 %v75_v17, %v94_v19 }
  0x8a   :  { %v76_v18 = vpop.f32.mrf.mxu0 }
  0x8b   :  { %v77_v20 = vadd.f32 %v407_v16, %v76_v18 }
  0x8d   :  { %v95_v21 = vmul.f32 0.01, %v77_v20 }
  0x8f   :  { %v103_v23 = vmax.f32 %v77_v20, %v95_v21 }
  0x91   :  { %v115_v24 = vpack.c.bf16 %v103_v23, %v102_v22 }
  0x92   :  { %v79_v25 = vpop.f32.mrf.mxu0 }
  0x93   :  { %379 = vmatmul.msk.bf16.vlgmr.msra.gmra.mxu1 %vm134_vm1, %v115_v24  ;;  %v80_v26 = vadd.f32 %v407_v16, %v79_v25 }
  0x95   :  { %v96_v28 = vmul.f32 0.01, %v80_v26 }
  0x97   :  { %v104_v31 = vmax.f32 %v80_v26, %v96_v28 }
  0x9a   :  { %v81_v27 = vpop.f32.mrf.mxu0 }
  0x9b   :  { %v82_v29 = vadd.f32 %v407_v16, %v81_v27  ;;  %v409_v27 = vld [vmem:[%s576_s6] ss:$0 sm:$0xff]  ;;  %s468_s6 = smov [#allocation2]  }
  0x9c   :  { %s349_s27 = sshll.u32 %s468_s6, 4  ;;  %s350_s27 = int_to_ptr.vmem [resolvable:$true] %s349_s27 }
  0x9d   :  { %v97_v30 = vmul.f32 0.01, %v82_v29 }
  0x9f   :  { %v105_v32 = vmax.f32 %v82_v29, %v97_v30 }
  0xa1   :  { %v116_v33 = vpack.c.bf16 %v105_v32, %v104_v31 }
  0xa2   :  { %v84_v34 = vpop.f32.mrf.mxu0 }
  0xa3   :  { %380 = vmatmul.msk.bf16.vlgmr.msra.gmra.mxu3 %vm134_vm1, %v116_v33  ;;  %v85_v35 = vadd.f32 %v407_v16, %v84_v34 }
  0xa5   :  { %v98_v37 = vmul.f32 0.01, %v85_v35 }
  0xa7   :  { %v106_v40 = vmax.f32 %v85_v35, %v98_v37 }
  0xaa   :  { %v86_v36 = vpop.f32.mrf.mxu0 }
  0xab   :  { %v87_v38 = vadd.f32 %v407_v16, %v86_v36 }
  0xad   :  { %v99_v39 = vmul.f32 0.01, %v87_v38 }
  0xaf   :  { %v107_v41 = vmax.f32 %v87_v38, %v99_v39 }
  0xb1   :  { %v117_v42 = vpack.c.bf16 %v107_v41, %v106_v40 }
  0xb2   :  { %v89_v43 = vpop.f32.mrf.mxu0 }
  0xb3   :  { %381 = vmatmul.msk.bf16.gmra.mxu3 %vm134_vm1, %v117_v42  ;;  %v90_v44 = vadd.f32 %v407_v16, %v89_v43 }
  0xb5   :  { %v100_v46 = vmul.f32 0.01, %v90_v44 }
  0xb7   :  { %v108_v49 = vmax.f32 %v90_v44, %v100_v46 }
  0xba   :  { %v91_v45 = vpop.f32.mrf.mxu0 }
  0xbb   :  { %v92_v47 = vadd.f32 %v407_v16, %v91_v45 }
  0xbd   :  { %v101_v48 = vmul.f32 0.01, %v92_v47 }
  0xbf   :  { %v109_v50 = vmax.f32 %v92_v47, %v101_v48 }
  0xc1   :  { %v118_v51 = vpack.c.bf16 %v109_v50, %v108_v49 }
  0xc3   :  { %382 = vmatmul.msk.bf16.gmra.mxu3 %vm134_vm1, %v118_v51 }
 0x110   :  { %v156_v54 = vpop.f32.mrf.mxu1 }
 0x111   :  { %v157_v56 = vadd.f32 %v408_v55, %v156_v54 }
 0x113   :  { %v176_v58 = vmul.f32 0.01, %v157_v56 }
 0x115   :  { %v184_v61 = vmax.f32 %v157_v56, %v176_v58 }
 0x118   :  { %v158_v57 = vpop.f32.mrf.mxu1 }
 0x119   :  { %v159_v59 = vadd.f32 %v408_v55, %v158_v57 }
 0x11b   :  { %v177_v60 = vmul.f32 0.01, %v159_v59 }
 0x11d   :  { %v185_v62 = vmax.f32 %v159_v59, %v177_v60 }
 0x11f   :  { %v197_v63 = vpack.c.bf16 %v185_v62, %v184_v61 }
 0x121   :  { %391 = vmatmul.msk.bf16.vlgmr.msrb.gmra.mxu1 %vm134_vm1, %v197_v63 }
 0x126   :  { %v161_v0 = vpop.f32.mrf.mxu3 }
 0x127   :  { %v162_v1 = vadd.f32 %v408_v55, %v161_v0 }
 0x129   :  { %v178_v3 = vmul.f32 0.01, %v162_v1 }
 0x12b   :  { %v186_v6 = vmax.f32 %v162_v1, %v178_v3 }
 0x12e   :  { %v163_v2 = vpop.f32.mrf.mxu3 }
 0x12f   :  { %v164_v4 = vadd.f32 %v408_v55, %v163_v2 }
 0x131   :  { %v179_v5 = vmul.f32 0.01, %v164_v4 }
 0x133   :  { %v187_v7 = vmax.f32 %v164_v4, %v179_v5 }
 0x135   :  { %v198_v8 = vpack.c.bf16 %v187_v7, %v186_v6 }
 0x136   :  { %v166_v9 = vpop.f32.mrf.mxu3 }
 0x137   :  { %392 = vmatmul.msk.bf16.vlgmr.msra.gmra.mxu2 %vm134_vm1, %v198_v8  ;;  %v167_v10 = vadd.f32 %v408_v55, %v166_v9 }
 0x139   :  { %v180_v12 = vmul.f32 0.01, %v167_v10 }
 0x13b   :  { %v188_v15 = vmax.f32 %v167_v10, %v180_v12 }
 0x13e   :  { %v168_v11 = vpop.f32.mrf.mxu3 }
 0x13f   :  { %v169_v13 = vadd.f32 %v408_v55, %v168_v11 }
 0x141   :  { %v181_v14 = vmul.f32 0.01, %v169_v13 }
 0x143   :  { %v189_v16 = vmax.f32 %v169_v13, %v181_v14 }
 0x145   :  { %v199_v17 = vpack.c.bf16 %v189_v16, %v188_v15 }
 0x146   :  { %v171_v18 = vpop.f32.mrf.mxu3 }
 0x147   :  { %393 = vmatmul.msk.bf16.gmra.mxu2 %vm134_vm1, %v199_v17  ;;  %v172_v19 = vadd.f32 %v408_v55, %v171_v18 }
 0x149   :  { %v182_v21 = vmul.f32 0.01, %v172_v19 }
 0x14b   :  { %v190_v24 = vmax.f32 %v172_v19, %v182_v21 }
 0x14e   :  { %v173_v20 = vpop.f32.mrf.mxu3 }
 0x14f   :  { %v174_v22 = vadd.f32 %v408_v55, %v173_v20 }
 0x151   :  { %v183_v23 = vmul.f32 0.01, %v174_v22 }
 0x153   :  { %v191_v25 = vmax.f32 %v174_v22, %v183_v23 }
 0x155   :  { %v200_v26 = vpack.c.bf16 %v191_v25, %v190_v24 }
 0x157   :  { %394 = vmatmul.msk.bf16.gmra.mxu2 %vm134_vm1, %v200_v26 }
 0x19e   :  { %v237_v28 = vpop.f32.mrf.mxu1 }
 0x19f   :  { %v238_v29 = vadd.f32 %v409_v27, %v237_v28 }
 0x1a1   :  { %257 = vmax.xlane.f32.xlu0 %v238_v29 }
 0x1a6   :  { %v239_v30 = vpop.f32.mrf.mxu1 }
 0x1a7   :  { %v240_v31 = vadd.f32 %v409_v27, %v239_v30 }
 0x1a9   :  { %259 = vmax.xlane.f32.xlu0 %v240_v31 }
 0x1ba   :  { %v242_v32 = vpop.f32.mrf.mxu2 }
 0x1bb   :  { %v243_v33 = vadd.f32 %v409_v27, %v242_v32 }
 0x1bd   :  { %261 = vmax.xlane.f32.xlu1 %v243_v33 }
 0x1c2   :  { %v244_v34 = vpop.f32.mrf.mxu2 }
 0x1c3   :  { %v245_v35 = vadd.f32 %v409_v27, %v244_v34 }
 0x1c5   :  { %263 = vmax.xlane.f32.xlu1 %v245_v35 }
 0x1ca   :  { %v247_v36 = vpop.f32.mrf.mxu2 }
 0x1cb   :  { %v248_v37 = vadd.f32 %v409_v27, %v247_v36 }
 0x1cd   :  { %265 = vmax.xlane.f32.xlu2 %v248_v37 }
 0x1d2   :  { %v249_v38 = vpop.f32.mrf.mxu2 }
 0x1d3   :  { %v250_v39 = vadd.f32 %v409_v27, %v249_v38 }
 0x1d5   :  { %267 = vmax.xlane.f32.xlu2 %v250_v39 }
 0x1da   :  { %v252_v40 = vpop.f32.mrf.mxu2 }
 0x1db   :  { %v253_v41 = vadd.f32 %v409_v27, %v252_v40 }
 0x1dd   :  { %269 = vmax.xlane.f32.xlu0 %v253_v41 }
 0x1e2   :  { %v254_v42 = vpop.f32.mrf.mxu2 }
 0x1e3   :  { %v255_v43 = vadd.f32 %v409_v27, %v254_v42 }
 0x1e5   :  { %271 = vmax.xlane.f32.xlu1 %v255_v43 }
 0x214   :  { %v258_v44 = vpop.xlane.xlu0 %257 }
 0x215   :  { %v273_v45 = vsub.f32 %v238_v29, %v258_v44 }
 0x217   :  { %v281_v46 = vmul.f32 1.442695, %v273_v45 }
 0x219   :  { %410 = vpow2.f32 %v281_v46 }
 0x21c   :  { %v260_v47 = vpop.xlane.xlu0 %259 }
 0x21d   :  { %v274_v48 = vsub.f32 %v240_v31, %v260_v47 }
 0x21f   :  { %v411_v49 = vpop.eup %410  ;;  %v283_v50 = vmul.f32 1.442695, %v274_v48 }
 0x220   :  { %297 = vadd.xlane.f32.xlu2 %v411_v49 }
 0x221   :  { %412 = vpow2.f32 %v283_v50 }
 0x227   :  { %v413_v51 = vpop.eup %412 }
 0x228   :  { %299 = vadd.xlane.f32.xlu0 %v413_v51 }
 0x230   :  { %v262_v52 = vpop.xlane.xlu1 %261 }
 0x231   :  { %v275_v53 = vsub.f32 %v243_v33, %v262_v52 }
 0x233   :  { %v285_v54 = vmul.f32 1.442695, %v275_v53 }
 0x235   :  { %414 = vpow2.f32 %v285_v54 }
 0x238   :  { %v264_v55 = vpop.xlane.xlu1 %263 }
 0x239   :  { %v276_v56 = vsub.f32 %v245_v35, %v264_v55 }
 0x23b   :  { %v415_v57 = vpop.eup %414  ;;  %v287_v58 = vmul.f32 1.442695, %v276_v56 }
 0x23c   :  { %301 = vadd.xlane.f32.xlu1 %v415_v57 }
 0x23d   :  { %416 = vpow2.f32 %v287_v58 }
 0x240   :  { %v266_v59 = vpop.xlane.xlu2 %265 }
 0x241   :  { %v277_v60 = vsub.f32 %v248_v37, %v266_v59 }
 0x243   :  { %v417_v61 = vpop.eup %416  ;;  %v289_v62 = vmul.f32 1.442695, %v277_v60 }
 0x244   :  { %303 = vadd.xlane.f32.xlu2 %v417_v61 }
 0x245   :  { %418 = vpow2.f32 %v289_v62 }
 0x248   :  { %v268_v63 = vpop.xlane.xlu2 %267 }
 0x249   :  { %v278_v0 = vsub.f32 %v250_v39, %v268_v63 }
 0x24b   :  { %v419_v1 = vpop.eup %418  ;;  %v291_v2 = vmul.f32 1.442695, %v278_v0 }
 0x24c   :  { %305 = vadd.xlane.f32.xlu0 %v419_v1 }
 0x24d   :  { %420 = vpow2.f32 %v291_v2 }
 0x250   :  { %v270_v3 = vpop.xlane.xlu0 %269 }
 0x251   :  { %v279_v4 = vsub.f32 %v253_v41, %v270_v3 }
 0x253   :  { %v421_v5 = vpop.eup %420  ;;  %v293_v6 = vmul.f32 1.442695, %v279_v4 }
 0x254   :  { %307 = vadd.xlane.f32.xlu1 %v421_v5 }
 0x255   :  { %422 = vpow2.f32 %v293_v6 }
 0x258   :  { %v272_v7 = vpop.xlane.xlu1 %271 }
 0x259   :  { %v280_v8 = vsub.f32 %v255_v43, %v272_v7 }
 0x25b   :  { %v423_v9 = vpop.eup %422  ;;  %v295_v10 = vmul.f32 1.442695, %v280_v8 }
 0x25c   :  { %309 = vadd.xlane.f32.xlu2 %v423_v9 }
 0x25d   :  { %424 = vpow2.f32 %v295_v10 }
 0x263   :  { %v425_v11 = vpop.eup %424 }
 0x264   :  { %311 = vadd.xlane.f32.xlu0 %v425_v11 }
 0x293   :  { %v298_v12 = vpop.xlane.xlu2 %297 }
 0x294   :  { %426 = vlog2.f32 %v298_v12 }
 0x29a   :  { %v427_v13 = vpop.eup %426 }
 0x29b   :  { %v314_v14 = vmul.f32 0.6931472, %v427_v13  ;;  %v300_v15 = vpop.xlane.xlu0 %299 }
 0x29c   :  { %428 = vlog2.f32 %v300_v15 }
 0x29d   :  { %v329_v16 = vsub.f32 %v273_v45, %v314_v14 }
 0x29f   :  { %337 = vst [vmem:[#allocation2] sm:$0xff] %v329_v16 }
 0x2a2   :  { %v429_v17 = vpop.eup %428 }
 0x2a3   :  { %v316_v18 = vmul.f32 0.6931472, %v429_v17 }
 0x2a5   :  { %v330_v19 = vsub.f32 %v274_v48, %v316_v18 }
 0x2a7   :  { %338 = vst [vmem:[#allocation2 + $0x8] sm:$0xff] %v330_v19 }
 0x2af   :  { %v302_v20 = vpop.xlane.xlu1 %301 }
 0x2b0   :  { %430 = vlog2.f32 %v302_v20 }
 0x2b6   :  { %v431_v21 = vpop.eup %430 }
 0x2b7   :  { %v318_v22 = vmul.f32 0.6931472, %v431_v21  ;;  %v304_v23 = vpop.xlane.xlu2 %303 }
 0x2b8   :  { %432 = vlog2.f32 %v304_v23 }
 0x2b9   :  { %v331_v24 = vsub.f32 %v275_v53, %v318_v22 }
 0x2bb   :  { %339 = vst [vmem:[#allocation2 + $0x10] sm:$0xff] %v331_v24 }
 0x2be   :  { %v433_v25 = vpop.eup %432 }
 0x2bf   :  { %v320_v26 = vmul.f32 0.6931472, %v433_v25  ;;  %v306_v27 = vpop.xlane.xlu0 %305 }
 0x2c0   :  { %434 = vlog2.f32 %v306_v27 }
 0x2c1   :  { %v332_v28 = vsub.f32 %v276_v56, %v320_v26 }
 0x2c3   :  { %340 = vst [vmem:[#allocation2 + $0x18] sm:$0xff] %v332_v28 }
 0x2c6   :  { %v435_v29 = vpop.eup %434 }
 0x2c7   :  { %v322_v30 = vmul.f32 0.6931472, %v435_v29  ;;  %v308_v31 = vpop.xlane.xlu1 %307 }
 0x2c8   :  { %436 = vlog2.f32 %v308_v31 }
 0x2c9   :  { %v333_v32 = vsub.f32 %v277_v60, %v322_v30 }
 0x2cb   :  { %341 = vst [vmem:[#allocation2 + $0x20] sm:$0xff] %v333_v32 }
 0x2ce   :  { %v437_v33 = vpop.eup %436 }
 0x2cf   :  { %v324_v34 = vmul.f32 0.6931472, %v437_v33  ;;  %v310_v35 = vpop.xlane.xlu2 %309 }
 0x2d0   :  { %438 = vlog2.f32 %v310_v35 }
 0x2d1   :  { %v334_v36 = vsub.f32 %v278_v0, %v324_v34 }
 0x2d3   :  { %342 = vst [vmem:[#allocation2 + $0x28] sm:$0xff] %v334_v36 }
 0x2d6   :  { %v439_v37 = vpop.eup %438 }
 0x2d7   :  { %v326_v38 = vmul.f32 0.6931472, %v439_v37  ;;  %v312_v39 = vpop.xlane.xlu0 %311 }
 0x2d8   :  { %440 = vlog2.f32 %v312_v39 }
 0x2d9   :  { %v335_v40 = vsub.f32 %v279_v4, %v326_v38 }
 0x2db   :  { %343 = vst [vmem:[#allocation2 + $0x30] sm:$0xff] %v335_v40 }
 0x2de   :  { %v441_v41 = vpop.eup %440 }
 0x2df   :  { %v328_v42 = vmul.f32 0.6931472, %v441_v41 }
 0x2e1   :  { %v336_v43 = vsub.f32 %v280_v8, %v328_v42 }
 0x2e3   :  { %344 = vst [vmem:[#allocation2 + $0x38] sm:$0xff] %v336_v43 }
 0x2e4   :  { %357 = dma.vmem_to_hbm [thread:$0]  %s350_s27, 1024, %s352_s30, [#allocation3], %s469_s8, %s469_s8, %s470_s9  }
 0x2e5   :  { %466 = dma.done.wait [#allocation3], 1024  }
 0x2e6   :  { %467 = vsyncadd [#allocation3], 4294966272 }
 0x2e7   :  { %362 = vsyncpa [#allocation3], 1 }

</bundles_post_ra>
